<compile_context>
chip_gen: v5e
topology: v5e:2x2
jax: 0.10.0
libtpu: 0.0.40
codegen_flags: <defaults>
</compile_context>

<pallas_src>
import functools

import jax
import jax.numpy as jnp
from jax import lax
from jax.experimental import pallas as pl
from jax.experimental.pallas import tpu as pltpu


def _clip_loss_kernel(temp_ref, img_ref, obj_ref, inv_img_ref, inv_obj_ref,
                      loss_ref, l_row, l_col, acc, scale_s, *, n_total):
    i = pl.program_id(0)            # row-block index (outer)
    j = pl.program_id(1)            # column-block index (inner, fastest)
    ni = pl.num_programs(0)
    nj = pl.num_programs(1)

    # ---- one-time prologue ---------------------------------------------------
    @pl.when(jnp.logical_and(i == 0, j == 0))
    def _():
        scale_s[0] = jnp.exp(temp_ref[0, 0])   # hoisted: exp(temp) once per call
        acc[0] = jnp.float32(0.0)              # sum_r log(sum_c exp(logit - scale))
        acc[1] = jnp.float32(0.0)              # sum of diagonal logits

    @pl.when(j == 0)                # new row block -> reset row accumulator
    def _():
        l_row[...] = jnp.zeros_like(l_row)

    @pl.when(i == 0)                # first visit of this column block
    def _():
        l_col[j] = jnp.zeros_like(l_col[j])

    scale = scale_s[0]

    # ---- logits block: NT matmul straight into the MXU (stored dtype) --------
    raw = lax.dot_general(
        img_ref[...], obj_ref[...],
        dimension_numbers=(((1,), (1,)), ((), ())),
        preferred_element_type=jnp.float32)                         # (bm, bn)

    # Normalization + temperature folded into two broadcast multiplies.
    logits = raw * (inv_img_ref[...] * scale) * inv_obj_ref[...]    # (bm, bn)

    # ---- shared exp tile, fixed shift = scale (|logit| <= scale) --------------
    # TODO(synk): if exp(temp) can exceed ~40 (CLIP clamps the logit scale at
    # 100), gate this on the clamp or fall back to an online-max logsumexp; with
    # the fixed shift a pathological all-(-1)-similarity row could underflow.
    p = jnp.exp(logits - scale)                                     # in (0, 1]

    l_row[...] = l_row[...] + jnp.sum(p, axis=1, keepdims=True)     # (bm, 1)
    l_col[j] = l_col[j] + jnp.sum(p, axis=0, keepdims=True)         # (1, bn)

    # ---- diagonal logits (labels == arange): only where row/col blocks meet ---
    @pl.when(i == j)
    def _():
        bm, bn = logits.shape
        rid = lax.broadcasted_iota(jnp.int32, (bm, bn), 0)
        cid = lax.broadcasted_iota(jnp.int32, (bm, bn), 1)
        acc[1] = acc[1] + jnp.sum(jnp.where(rid == cid, logits, 0.0))

    # ---- fold a finished row block into the scalar accumulator ----------------
    @pl.when(j == nj - 1)
    def _():
        acc[0] = acc[0] + jnp.sum(
            jnp.log(jnp.maximum(l_row[...], jnp.float32(1e-37))))

    # ---- finalize the loss at the very last grid step --------------------------
    @pl.when(jnp.logical_and(i == ni - 1, j == nj - 1))
    def _():
        n_f = jnp.float32(n_total)
        col_log = jnp.sum(
            jnp.log(jnp.maximum(l_col[...], jnp.float32(1e-37))))
        # lse_row[r] = scale + log(l_row[r]);  lse_col[c] = scale + log(l_col[c])
        loss_img = (acc[0] + n_f * scale - acc[1]) / n_f
        loss_obj = (col_log + n_f * scale - acc[1]) / n_f
        loss_ref[0, 0] = jnp.float32(0.5) * (loss_img + loss_obj)


def clip_loss(batch_img_emb, batch_obj_emb, temp, *,
              block=None, matmul_dtype=jnp.bfloat16):
    """Symmetric CLIP contrastive loss (forward pass only). Returns a scalar f32."""
    # TODO(synk): no custom_vjp yet -> eval/forward only; a backward kernel (or
    # saving the row/col LSE for a recompute-based backward) is needed for training.
    n, d = batch_img_emb.shape
    if block is None:
        block = n if n <= 512 else 512
    # TODO(synk): pad n to a multiple of `block` (mask padded rows/cols out of both
    # LSEs and the diagonal) for batch sizes not divisible by the block size.
    assert n % block == 0, "batch size must be divisible by the block size"
    nblk = n // block

    # Inverse L2 norms (F.normalize semantics: 1 / max(||x||, 1e-12)), computed once
    # in f32 from the original inputs; the actual scaling stays fused in-kernel.
    eps_sq = jnp.float32(1e-24)
    img32 = jnp.asarray(batch_img_emb, jnp.float32)
    obj32 = jnp.asarray(batch_obj_emb, jnp.float32)
    inv_img = lax.rsqrt(jnp.maximum(
        jnp.sum(img32 * img32, axis=1, keepdims=True), eps_sq))            # (n, 1)
    inv_obj = lax.rsqrt(jnp.maximum(
        jnp.sum(obj32 * obj32, axis=1, keepdims=True), eps_sq)).reshape(1, n)  # (1, n)

    img_mm = batch_img_emb.astype(matmul_dtype)
    obj_mm = batch_obj_emb.astype(matmul_dtype)
    temp_arr = jnp.asarray(temp, jnp.float32).reshape(1, 1)

    kernel = functools.partial(_clip_loss_kernel, n_total=n)

    # Explicit VMEM budget (v7x has 64 MiB physical; after the bf16 + norm-fold
    # changes even block=1024 fits comfortably).
    itemsize = jnp.dtype(matmul_dtype).itemsize
    vmem_est = (4 * block * d * itemsize          # img + obj, double buffered
                + 6 * block * block * 4           # logits / exp-tile temporaries
                + 2 * nblk * block * 4            # column accumulators
                + (2 << 20))                      # headroom
    vmem_limit = int(min(max(vmem_est, 32 * 1024 * 1024), 64 * 1024 * 1024))

    out = pl.pallas_call(
        kernel,
        out_shape=jax.ShapeDtypeStruct((1, 1), jnp.float32),
        grid=(nblk, nblk),
        in_specs=[
            pl.BlockSpec(memory_space=pltpu.MemorySpace.SMEM),        # temp
            pl.BlockSpec((block, d), lambda i, j: (i, 0)),            # img rows
            # obj is the only re-streamed operand; bump to pipeline_mode=
            # pl.Buffered(3) here if its DMA becomes exposed after the compute
            # shrink (cheap to try, small VMEM cost).
            pl.BlockSpec((block, d), lambda i, j: (j, 0)),            # obj rows
            pl.BlockSpec((block, 1), lambda i, j: (i, 0)),            # 1/||img||
            pl.BlockSpec((1, block), lambda i, j: (0, j)),            # 1/||obj||
        ],
        out_specs=pl.BlockSpec(memory_space=pltpu.MemorySpace.SMEM),  # scalar loss
        scratch_shapes=[
            pltpu.VMEM((block, 1), jnp.float32),        # l_row (lane-sparse but tiny)
            pltpu.VMEM((nblk, 1, block), jnp.float32),  # l_col (all column blocks)
            pltpu.SMEM((2,), jnp.float32),              # [row_log_sum, diag_sum]
            pltpu.SMEM((1,), jnp.float32),              # scale = exp(temp)
        ],
        compiler_params=pltpu.CompilerParams(
            # Both axes update shared accumulators -> sequential on one core.
            # TODO(synk): per-core accumulators + logsumexp-combine epilogue to
            # split the row axis across v7x's 2 TensorCores (~2x there).
            dimension_semantics=("arbitrary", "arbitrary"),
            vmem_limit_bytes=vmem_limit),
    )(temp_arr, img_mm, obj_mm, inv_img, inv_obj)
    return out[0, 0]


if __name__ == "__main__":
    temp = jnp.float32(0.07)   # matches nn.Parameter(torch.tensor(0.07))

    def ref(img, obj, t):
        img_n = img / jnp.maximum(jnp.linalg.norm(img, axis=1, keepdims=True), 1e-12)
        obj_n = obj / jnp.maximum(jnp.linalg.norm(obj, axis=1, keepdims=True), 1e-12)
        logits = img_n @ obj_n.T * jnp.exp(t)
        labels = jnp.arange(logits.shape[0])

        def ce(lg):
            lse = jax.nn.logsumexp(lg, axis=1)
            return jnp.mean(lse - lg[jnp.arange(lg.shape[0]), labels])

        return (ce(logits) + ce(logits.T)) / 2

    key = jax.random.PRNGKey(0)
    k1, k2, k3, k4 = jax.random.split(key, 4)

    # Case 1: single-block path (block == n), bf16 and f32 MXU inputs.
    n, d = 8, 32
    img = jax.random.normal(k1, (n, d), dtype=jnp.float32)
    obj = jax.random.normal(k2, (n, d), dtype=jnp.float32)
    expect = ref(img, obj, temp)
    loss_bf16 = clip_loss(img, obj, temp)
    jax.block_until_ready(loss_bf16)
    assert jnp.allclose(loss_bf16, expect, rtol=5e-2, atol=5e-2), (loss_bf16, expect)
    loss_f32 = clip_loss(img, obj, temp, matmul_dtype=jnp.float32)
    jax.block_until_ready(loss_f32)
    assert jnp.allclose(loss_f32, expect, rtol=1e-5, atol=1e-5), (loss_f32, expect)

    # Case 2: 2x2 grid (block=128 keeps the (1, block) inv-norm stream lane
    # aligned) exercising the cross-block row accumulation, the persistent
    # column sums and the block-diagonal handling.
    n2, d2 = 256, 64
    img2 = jax.random.normal(k3, (n2, d2), dtype=jnp.float32)
    obj2 = jax.random.normal(k4, (n2, d2), dtype=jnp.float32)
    expect2 = ref(img2, obj2, temp)
    loss2_f32 = clip_loss(img2, obj2, temp, block=128, matmul_dtype=jnp.float32)
    jax.block_until_ready(loss2_f32)
    assert jnp.allclose(loss2_f32, expect2, rtol=1e-4, atol=1e-4), (loss2_f32, expect2)
    loss2_bf16 = clip_loss(img2, obj2, temp, block=128)
    jax.block_until_ready(loss2_bf16)
    assert jnp.allclose(loss2_bf16, expect2, rtol=5e-2, atol=5e-2), (loss2_bf16, expect2)

    print("KERNEL_OK")
</pallas_src>

<mosaic_0001>
module attributes {stable_mosaic.version = 11 : i64} {
  func.func @_clip_loss_kernel(%arg0: i32, %arg1: i32, %arg2: memref<1x1xf32, #tpu.memory_space<smem>>, %arg3: memref<8x32xbf16, #tpu.memory_space<vmem>>, %arg4: memref<8x32xbf16, #tpu.memory_space<vmem>>, %arg5: memref<8x1xf32, #tpu.memory_space<vmem>>, %arg6: memref<1x8xf32, #tpu.memory_space<vmem>>, %arg7: memref<1x1xf32, #tpu.memory_space<smem>>, %arg8: memref<8x1xf32, #tpu.memory_space<vmem>>, %arg9: memref<1x1x8xf32, #tpu.memory_space<vmem>>, %arg10: memref<2xf32, #tpu.memory_space<smem>>, %arg11: memref<1xf32, #tpu.memory_space<smem>>) attributes {dimension_semantics = [#tpu.dimension_semantics<arbitrary>, #tpu.dimension_semantics<arbitrary>], iteration_bounds = array<i64: 1, 1>, scalar_prefetch = 0 : i64, scratch_operands = 4 : i64, tpu.core_type = #tpu.core_type<tc>, window_params = [{transform_indices = @transform_0, window_bounds = array<i64: 1, 1>}, {transform_indices = @transform_1, window_bounds = array<i64: 8, 32>}, {transform_indices = @transform_2, window_bounds = array<i64: 8, 32>}, {transform_indices = @transform_3, window_bounds = array<i64: 8, 1>}, {transform_indices = @transform_4, window_bounds = array<i64: 1, 8>}, {transform_indices = @transform_5, window_bounds = array<i64: 1, 1>}]} {
    %c0_i32 = arith.constant 0 : i32
    %0 = arith.cmpi eq, %arg0, %c0_i32 : i32
    %c0_i32_0 = arith.constant 0 : i32
    %1 = arith.cmpi eq, %arg1, %c0_i32_0 : i32
    %2 = arith.andi %0, %1 : i1
    %3 = arith.extui %2 : i1 to i32
    %c0_i32_1 = arith.constant 0 : i32
    %4 = arith.cmpi ne, %3, %c0_i32_1 : i32
    scf.if %4 {
      %c0_30 = arith.constant 0 : index
      %c0_31 = arith.constant 0 : index
      %52 = memref.load %arg2[%c0_30, %c0_31] : memref<1x1xf32, #tpu.memory_space<smem>>
      %53 = math.exp %52 : f32
      %c0_32 = arith.constant 0 : index
      %54 = memref.load %arg11[%c0_32] : memref<1xf32, #tpu.memory_space<smem>>
      memref.store %53, %arg11[%c0_32] : memref<1xf32, #tpu.memory_space<smem>>
      %cst_33 = arith.constant 0.000000e+00 : f32
      %c0_34 = arith.constant 0 : index
      %55 = memref.load %arg10[%c0_34] : memref<2xf32, #tpu.memory_space<smem>>
      memref.store %cst_33, %arg10[%c0_34] : memref<2xf32, #tpu.memory_space<smem>>
      %cst_35 = arith.constant 0.000000e+00 : f32
      %c1 = arith.constant 1 : index
      %56 = memref.load %arg10[%c1] : memref<2xf32, #tpu.memory_space<smem>>
      memref.store %cst_35, %arg10[%c1] : memref<2xf32, #tpu.memory_space<smem>>
    } else {
    }
    %c0_i32_2 = arith.constant 0 : i32
    %5 = arith.cmpi eq, %arg1, %c0_i32_2 : i32
    %6 = arith.extui %5 : i1 to i32
    %c0_i32_3 = arith.constant 0 : i32
    %7 = arith.cmpi ne, %6, %c0_i32_3 : i32
    scf.if %7 {
      %cst_30 = arith.constant 0.000000e+00 : f32
      %52 = vector.broadcast %cst_30 : f32 to vector<8x1xf32>
      %c0_31 = arith.constant 0 : index
      %c0_32 = arith.constant 0 : index
      %53 = vector.load %arg8[%c0_31, %c0_32] : memref<8x1xf32, #tpu.memory_space<vmem>>, vector<8x1xf32>
      tpu.vector_store %arg8[%c0_31, %c0_32], %52 {strides = array<i32>} : memref<8x1xf32, #tpu.memory_space<vmem>>, vector<8x1xf32>,
    } else {
    }
    %c0_i32_4 = arith.constant 0 : i32
    %8 = arith.cmpi eq, %arg0, %c0_i32_4 : i32
    %9 = arith.extui %8 : i1 to i32
    %c0_i32_5 = arith.constant 0 : i32
    %10 = arith.cmpi ne, %9, %c0_i32_5 : i32
    scf.if %10 {
      %cst_30 = arith.constant 0.000000e+00 : f32
      %52 = vector.broadcast %cst_30 : f32 to vector<1x8xf32>
      %53 = arith.index_cast %arg1 : i32 to index
      %c0_31 = arith.constant 0 : index
      %c0_32 = arith.constant 0 : index
      %54 = vector.load %arg9[%53, %c0_31, %c0_32] : memref<1x1x8xf32, #tpu.memory_space<vmem>>, vector<1x1x8xf32>
      %55 = vector.shape_cast %54 : vector<1x1x8xf32> to vector<1x8xf32>
      %56 = vector.shape_cast %52 : vector<1x8xf32> to vector<1x1x8xf32>
      tpu.vector_store %arg9[%53, %c0_31, %c0_32], %56 {strides = array<i32>} : memref<1x1x8xf32, #tpu.memory_space<vmem>>, vector<1x1x8xf32>,
    } else {
    }
    %c0 = arith.constant 0 : index
    %11 = memref.load %arg11[%c0] : memref<1xf32, #tpu.memory_space<smem>>
    %c0_6 = arith.constant 0 : index
    %c0_7 = arith.constant 0 : index
    %12 = vector.load %arg3[%c0_6, %c0_7] : memref<8x32xbf16, #tpu.memory_space<vmem>>, vector<8x32xbf16>
    %c0_8 = arith.constant 0 : index
    %c0_9 = arith.constant 0 : index
    %13 = vector.load %arg4[%c0_8, %c0_9] : memref<8x32xbf16, #tpu.memory_space<vmem>>, vector<8x32xbf16>
    %cst = arith.constant dense<0.000000e+00> : vector<8x8xf32>
    %14 = tpu.matmul %12, %13, %cst {dimension_numbers = #tpu.dot_dimension_numbers<[1], [1], [0], [0], [0, 0, 1, 0], [], []>} : vector<8x32xbf16>, vector<8x32xbf16>, vector<8x8xf32> -> vector<8x8xf32>
    %c0_10 = arith.constant 0 : index
    %c0_11 = arith.constant 0 : index
    %15 = vector.load %arg5[%c0_10, %c0_11] : memref<8x1xf32, #tpu.memory_space<vmem>>, vector<8x1xf32>
    %16 = vector.broadcast %11 : f32 to vector<8x1xf32>
    %17 = arith.mulf %15, %16 : vector<8x1xf32>
    %18 = vector.broadcast %17 : vector<8x1xf32> to vector<8x8xf32>
    %19 = arith.mulf %14, %18 : vector<8x8xf32>
    %c0_12 = arith.constant 0 : index
    %c0_13 = arith.constant 0 : index
    %20 = vector.load %arg6[%c0_12, %c0_13] : memref<1x8xf32, #tpu.memory_space<vmem>>, vector<1x8xf32>
    %21 = vector.broadcast %20 : vector<1x8xf32> to vector<8x8xf32>
    %22 = arith.mulf %19, %21 : vector<8x8xf32>
    %23 = vector.broadcast %11 : f32 to vector<8x8xf32>
    %24 = arith.subf %22, %23 : vector<8x8xf32>
    %25 = math.exp %24 : vector<8x8xf32>
    %c0_14 = arith.constant 0 : index
    %c0_15 = arith.constant 0 : index
    %26 = vector.load %arg8[%c0_14, %c0_15] : memref<8x1xf32, #tpu.memory_space<vmem>>, vector<8x1xf32>
    %cst_16 = arith.constant dense<0.000000e+00> : vector<8xf32>
    %27 = vector.multi_reduction <add>, %25, %cst_16 [1] : vector<8x8xf32> to vector<8xf32>
    %28 = vector.shape_cast %27 : vector<8xf32> to vector<8x1xf32>
    %29 = arith.addf %26, %28 : vector<8x1xf32>
    %c0_17 = arith.constant 0 : index
    %c0_18 = arith.constant 0 : index
    %30 = vector.load %arg8[%c0_17, %c0_18] : memref<8x1xf32, #tpu.memory_space<vmem>>, vector<8x1xf32>
    tpu.vector_store %arg8[%c0_17, %c0_18], %29 {strides = array<i32>} : memref<8x1xf32, #tpu.memory_space<vmem>>, vector<8x1xf32>,
    %31 = arith.index_cast %arg1 : i32 to index
    %c0_19 = arith.constant 0 : index
    %c0_20 = arith.constant 0 : index
    %32 = vector.load %arg9[%31, %c0_19, %c0_20] : memref<1x1x8xf32, #tpu.memory_space<vmem>>, vector<1x1x8xf32>
    %33 = vector.shape_cast %32 : vector<1x1x8xf32> to vector<1x8xf32>
    %cst_21 = arith.constant dense<0.000000e+00> : vector<8xf32>
    %34 = vector.multi_reduction <add>, %25, %cst_21 [0] : vector<8x8xf32> to vector<8xf32>
    %35 = vector.shape_cast %34 : vector<8xf32> to vector<1x8xf32>
    %36 = arith.addf %33, %35 : vector<1x8xf32>
    %37 = arith.index_cast %arg1 : i32 to index
    %c0_22 = arith.constant 0 : index
    %c0_23 = arith.constant 0 : index
    %38 = vector.load %arg9[%37, %c0_22, %c0_23] : memref<1x1x8xf32, #tpu.memory_space<vmem>>, vector<1x1x8xf32>
    %39 = vector.shape_cast %38 : vector<1x1x8xf32> to vector<1x8xf32>
    %40 = vector.shape_cast %36 : vector<1x8xf32> to vector<1x1x8xf32>
    tpu.vector_store %arg9[%37, %c0_22, %c0_23], %40 {strides = array<i32>} : memref<1x1x8xf32, #tpu.memory_space<vmem>>, vector<1x1x8xf32>,
    %41 = arith.cmpi eq, %arg0, %arg1 : i32
    %42 = arith.extui %41 : i1 to i32
    %c0_i32_24 = arith.constant 0 : i32
    %43 = arith.cmpi ne, %42, %c0_i32_24 : i32
    scf.if %43 {
      %52 = tpu.iota {dimensions = array<i32: 0>} : vector<8x8xi32>
      %53 = tpu.iota {dimensions = array<i32: 1>} : vector<8x8xi32>
      %c1 = arith.constant 1 : index
      %54 = memref.load %arg10[%c1] : memref<2xf32, #tpu.memory_space<smem>>
      %55 = arith.cmpi eq, %52, %53 : vector<8x8xi32>
      %cst_30 = arith.constant 0.000000e+00 : f32
      %56 = vector.broadcast %cst_30 : f32 to vector<8x8xf32>
      %57 = arith.select %55, %22, %56 : vector<8x8xi1>, vector<8x8xf32>
      %58 = vector.shape_cast %57 : vector<8x8xf32> to vector<1x8x8xf32>
      %cst_31 = arith.constant dense<0.000000e+00> : vector<1xf32>
      %59 = vector.multi_reduction <add>, %58, %cst_31 [1, 2] : vector<1x8x8xf32> to vector<1xf32>
      %60 = vector.shape_cast %59 : vector<1xf32> to vector<1x1x1xf32>
      %61 = vector.extract %60[0, 0, 0] : f32 from vector<1x1x1xf32>
      %62 = arith.addf %54, %61 : f32
      %c1_32 = arith.constant 1 : index
      %63 = memref.load %arg10[%c1_32] : memref<2xf32, #tpu.memory_space<smem>>
      memref.store %62, %arg10[%c1_32] : memref<2xf32, #tpu.memory_space<smem>>
    } else {
    }
    %c0_i32_25 = arith.constant 0 : i32
    %44 = arith.cmpi eq, %arg1, %c0_i32_25 : i32
    %45 = arith.extui %44 : i1 to i32
    %c0_i32_26 = arith.constant 0 : i32
    %46 = arith.cmpi ne, %45, %c0_i32_26 : i32
    scf.if %46 {
      %c0_30 = arith.constant 0 : index
      %52 = memref.load %arg10[%c0_30] : memref<2xf32, #tpu.memory_space<smem>>
      %c0_31 = arith.constant 0 : index
      %c0_32 = arith.constant 0 : index
      %53 = vector.load %arg8[%c0_31, %c0_32] : memref<8x1xf32, #tpu.memory_space<vmem>>, vector<8x1xf32>
      %cst_33 = arith.constant 9.99999991E-38 : f32
      %54 = vector.broadcast %cst_33 : f32 to vector<8x1xf32>
      %55 = arith.maximumf %53, %54 : vector<8x1xf32>
      %56 = math.log %55 : vector<8x1xf32>
      %57 = vector.shape_cast %56 : vector<8x1xf32> to vector<1x8x1xf32>
      %cst_34 = arith.constant dense<0.000000e+00> : vector<1xf32>
      %58 = vector.multi_reduction <add>, %57, %cst_34 [1, 2] : vector<1x8x1xf32> to vector<1xf32>
      %59 = vector.shape_cast %58 : vector<1xf32> to vector<1x1x1xf32>
      %60 = vector.extract %59[0, 0, 0] : f32 from vector<1x1x1xf32>
      %61 = arith.addf %52, %60 : f32
      %c0_35 = arith.constant 0 : index
      %62 = memref.load %arg10[%c0_35] : memref<2xf32, #tpu.memory_space<smem>>
      memref.store %61, %arg10[%c0_35] : memref<2xf32, #tpu.memory_space<smem>>
    } else {
    }
    %c0_i32_27 = arith.constant 0 : i32
    %47 = arith.cmpi eq, %arg0, %c0_i32_27 : i32
    %c0_i32_28 = arith.constant 0 : i32
    %48 = arith.cmpi eq, %arg1, %c0_i32_28 : i32
    %49 = arith.andi %47, %48 : i1
    %50 = arith.extui %49 : i1 to i32
    %c0_i32_29 = arith.constant 0 : i32
    %51 = arith.cmpi ne, %50, %c0_i32_29 : i32
    scf.if %51 {
      %c0_30 = arith.constant 0 : index
      %c0_31 = arith.constant 0 : index
      %c0_32 = arith.constant 0 : index
      %52 = vector.load %arg9[%c0_30, %c0_31, %c0_32] : memref<1x1x8xf32, #tpu.memory_space<vmem>>, vector<1x1x8xf32>
      %cst_33 = arith.constant 9.99999991E-38 : f32
      %53 = vector.broadcast %cst_33 : f32 to vector<1x1x8xf32>
      %54 = arith.maximumf %52, %53 : vector<1x1x8xf32>
      %55 = math.log %54 : vector<1x1x8xf32>
      %56 = vector.shape_cast %55 : vector<1x1x8xf32> to vector<1x1x1x8xf32>
      %cst_34 = arith.constant dense<0.000000e+00> : vector<1xf32>
      %57 = vector.multi_reduction <add>, %56, %cst_34 [1, 2, 3] : vector<1x1x1x8xf32> to vector<1xf32>
      %58 = vector.shape_cast %57 : vector<1xf32> to vector<1x1x1x1xf32>
      %59 = vector.extract %58[0, 0, 0, 0] : f32 from vector<1x1x1x1xf32>
      %c0_35 = arith.constant 0 : index
      %60 = memref.load %arg10[%c0_35] : memref<2xf32, #tpu.memory_space<smem>>
      %cst_36 = arith.constant 8.000000e+00 : f32
      %61 = arith.mulf %cst_36, %11 : f32
      %62 = arith.addf %60, %61 : f32
      %c1 = arith.constant 1 : index
      %63 = memref.load %arg10[%c1] : memref<2xf32, #tpu.memory_space<smem>>
      %64 = arith.subf %62, %63 : f32
      %cst_37 = arith.constant 8.000000e+00 : f32
      %65 = arith.divf %64, %cst_37 : f32
      %cst_38 = arith.constant 8.000000e+00 : f32
      %66 = arith.mulf %cst_38, %11 : f32
      %67 = arith.addf %59, %66 : f32
      %c1_39 = arith.constant 1 : index
      %68 = memref.load %arg10[%c1_39] : memref<2xf32, #tpu.memory_space<smem>>
      %69 = arith.subf %67, %68 : f32
      %cst_40 = arith.constant 8.000000e+00 : f32
      %70 = arith.divf %69, %cst_40 : f32
      %71 = arith.addf %65, %70 : f32
      %cst_41 = arith.constant 5.000000e-01 : f32
      %72 = arith.mulf %cst_41, %71 : f32
      %c0_42 = arith.constant 0 : index
      %c0_43 = arith.constant 0 : index
      %73 = memref.load %arg7[%c0_42, %c0_43] : memref<1x1xf32, #tpu.memory_space<smem>>
      memref.store %72, %arg7[%c0_42, %c0_43] : memref<1x1xf32, #tpu.memory_space<smem>>
    } else {
    }
    return
  }
  func.func @transform_0(%arg0: i32, %arg1: i32) -> (i32, i32) {
    %c0_i32 = arith.constant 0 : i32
    %c0_i32_0 = arith.constant 0 : i32
    %c0_i32_1 = arith.constant 0 : i32
    return %c0_i32, %c0_i32_0 : i32, i32
  }
  func.func @transform_1(%arg0: i32, %arg1: i32) -> (i32, i32) {
    %c0_i32 = arith.constant 0 : i32
    %c0_i32_0 = arith.constant 0 : i32
    return %arg0, %c0_i32 : i32, i32
  }
  func.func @transform_2(%arg0: i32, %arg1: i32) -> (i32, i32) {
    %c0_i32 = arith.constant 0 : i32
    %c0_i32_0 = arith.constant 0 : i32
    return %arg1, %c0_i32 : i32, i32
  }
  func.func @transform_3(%arg0: i32, %arg1: i32) -> (i32, i32) {
    %c0_i32 = arith.constant 0 : i32
    %c0_i32_0 = arith.constant 0 : i32
    return %arg0, %c0_i32 : i32, i32
  }
  func.func @transform_4(%arg0: i32, %arg1: i32) -> (i32, i32) {
    %c0_i32 = arith.constant 0 : i32
    %c0_i32_0 = arith.constant 0 : i32
    return %c0_i32, %arg1 : i32, i32
  }
  func.func @transform_5(%arg0: i32, %arg1: i32) -> (i32, i32) {
    %c0_i32 = arith.constant 0 : i32
    %c0_i32_0 = arith.constant 0 : i32
    %c0_i32_1 = arith.constant 0 : i32
    return %c0_i32, %c0_i32_0 : i32, i32
  }
}

</mosaic_0001>

<bundles_post_ra>
// kernel: tpu_custom_call.1
= control target key start
LH: loop header
LB: loop body
LE: loop exit
PB: predicated region body
PF: predicated region fallthrough
CT: control target
= control target key end

     0   :  { %vm53_vm0 = vcmask 261120   ;;  %s318_s0 = inlined_call_operand.<no memory space> [shape: f32[1,1], index: 0, kind: input, shape index: {}]   ;;  %s319_s1 = inlined_call_operand.vmem [shape: bf16[8,32], index: 1, kind: input, shape index: {}]   ;;  %s320_s2 = inlined_call_operand.vmem [shape: bf16[8,32], index: 2, kind: input, shape index: {}]   ;;  %s321_s3 = inlined_call_operand.vmem [shape: f32[8,1], index: 3, kind: input, shape index: {}]   ;;  %s322_s4 = inlined_call_operand.vmem [shape: f32[1,8], index: 4, kind: input, shape index: {}]   ;;  %s323_s5 = inlined_call_operand.hbm [shape: f32[1,1], index: 5, kind: output, shape index: {}]  }
   0x1   :  { %v30_v0 = vstv %s318_s0  ;;  %v52_v1 = vld [vmem:[%s320_s2] sm:$0xf] }
   0x2   :  { %v31_v2 = vmul.f32 1.442695, %v30_v0  ;;  %v58_v3 = vsel %vm53_vm0, %v52_v1, 0 }
   0x3   :  { %67 = vmatpush.bf16.xpose.msra.mxu0 %v58_v3 }
   0x4   :  { %11 = vsyncpa [#allocation8], 0  ;;  %232 = vpow2.f32 %v31_v2  ;;  %v51_v4 = vld [vmem:[%s319_s1] sm:$0xf]  ;;  %v256_v6 = vmov 0   ;;  %vm48_vm1 = vcmask 57344   ;;  %v112_v13 = vlaneseq }
   0x5   :  { %230 = vset.pattern.permute.xlu0 %v256_v6  ;;  %v73_v7 = vld [vmem:[%s321_s3] sm:$0xff]  ;;  %v257_v12 = vmov 0.0   ;;  %vm91_vm3 = vcmask 64512   ;;  %vm43_vm4 = vcmask 7168   ;;  %v258_v54 = vmov 8.0   ;;  %s203_s12 = sshll.u32 %s323_s5, 4  ;;  %s204_s12 = int_to_ptr.hbm [resolvable:$true] %s203_s12 }
   0x6   :  { %49 = vst.msk [vmem:[#allocation3] sm:$0x1] %vm48_vm1, %v257_v12  ;;  %v113_v14 = vshrl.u32 %v112_v13, 7  ;;  %v115_v15 = vand.u32 127, %v112_v13  ;;  %v231_v16 = vld [vmem:[%s322_s4] ss:$0 sm:$0xff] }
   0x7   :  { %44 = vst.msk [vmem:[#allocation2] sm:$0xff] %vm43_vm4, %v257_v12  ;;  %s259_s15 = smov [#allocation7]  }
   0x8   :  { %vm117_vm2 = vcmp.eq.s32.totalorder %v113_v14, %v115_v15 }
   0xa   :  { %v233_v5 = vpop.eup %232  ;;  %213 = vmatmul.msk.bf16.vlgmr.msra.gmra.mxu0 %vm53_vm0, %v51_v4 }
   0xb   :  { %216 = vpush %v233_v5 }
   0xd   :  { %v98_v31 = vld [vmem:[#allocation3] sm:$0x1] }
   0xe   :  { %v90_v44 = vld [vmem:[#allocation2] sm:$0xff] }
  0x3c   :  { %s302_s2 = spop %216 }
  0x3d   :  { %v74_v8 = vstv %s302_s2  ;;  %s170_s3 = smul.f32 8.0, %s302_s2 }
  0x3e   :  { %v75_v9 = vmul.f32 %v74_v8, %v73_v7 }
  0x40   :  { %78 = vperm.xlu0 %230, %v75_v9  }
  0x87   :  { %v69_v10 = vpop.f32.mrf.mxu0 }
  0x8f   :  { %v71_v11 = vpop.f32.mrf.mxu0 }
  0xb2   :  { %v79_v17 = vpop.permute.xlu0 %78 }
  0xb3   :  { %v81_v18 = vmul.f32 %v79_v17, %v69_v10 }
  0xb5   :  { %v86_v19 = vmul.f32 %v231_v16, %v81_v18 }
  0xb7   :  { %v87_v20 = vsub.f32 %v86_v19, %v74_v8  ;;  %v118_v21 = vsel %vm117_vm2, %v86_v19, 0.0 }
  0xb8   :  { %v119_v22 = vsel %vm91_vm3, %v118_v21, 0.0 }
  0xb9   :  { %v88_v23 = vmul.f32 1.442695, %v87_v20  ;;  %120 = vadd.xlane.f32.xlu1 %v119_v22 }
  0xbb   :  { %234 = vpow2.f32 %v88_v23 }
  0xc1   :  { %v235_v24 = vpop.eup %234 }
  0xc2   :  { %v92_v25 = vsel %vm91_vm3, %v235_v24, 0.0 }
  0xc3   :  { %93 = vadd.xlane.f32.xlu0 %v92_v25  ;;  %v99_v26 = vrot.slane %v92_v25, 4 }
  0xc5   :  { %v100_v27 = vadd.f32 %v99_v26, %v92_v25 }
  0xc7   :  { %v101_v28 = vrot.slane %v100_v27, 2 }
  0xc9   :  { %v102_v29 = vadd.f32 %v101_v28, %v100_v27 }
  0xcb   :  { %v103_v30 = vrot.slane %v102_v29, 1 }
  0xcd   :  { %v104_v32 = vadd.f32 %v103_v30, %v102_v29 }
  0xcf   :  { %v105_v33 = vadd.f32 %v104_v32, %v98_v31 }
  0xd1   :  { %107 = vst.msk [vmem:[#allocation3] sm:$0x1] %vm48_vm1, %v105_v33 }
  0xd8   :  { %v155_v34 = vld [vmem:[#allocation3] sm:$0x1] }
  0xd9   :  { %v156_v35 = vmax.f32 %v155_v34, 1e-37 }
  0xdb   :  { %236 = vlog2.f32 %v156_v35 }
  0xe1   :  { %v237_v36 = vpop.eup %236 }
  0xe2   :  { %v158_v37 = vmul.f32 0.6931472, %v237_v36 }
  0xe4   :  { %v159_v38 = vsel %vm48_vm1, %v158_v37, 0.0 }
  0xe5   :  { %160 = vadd.xlane.f32.xlu2 %v159_v38 }
 0x12c   :  { %v121_v39 = vpop.xlane.xlu1 %120 }
 0x12d   :  { %v122_v40 = vrot.slane %v121_v39, 4 }
 0x12f   :  { %v123_v41 = vadd.f32 %v122_v40, %v121_v39 }
 0x131   :  { %v124_v42 = vrot.slane %v123_v41, 2 }
 0x133   :  { %v125_v43 = vadd.f32 %v124_v42, %v123_v41 }
 0x135   :  { %v126_v45 = vrot.slane %v125_v43, 1 }
 0x136   :  { %v94_v46 = vpop.xlane.xlu0 %93 }
 0x137   :  { %v95_v47 = vadd.f32 %v94_v46, %v90_v44  ;;  %v127_v48 = vadd.f32 %v126_v45, %v125_v43 }
 0x139   :  { %97 = vst.msk [vmem:[#allocation2] sm:$0xff] %vm43_vm4, %v95_v47 }
 0x13a   :  { %218 = vpush %v127_v48 }
 0x140   :  { %v136_v49 = vld [vmem:[#allocation2] sm:$0xff] }
 0x141   :  { %v137_v50 = vmax.f32 %v136_v49, 1e-37 }
 0x143   :  { %238 = vlog2.f32 %v137_v50 }
 0x144   :  { %240 = vrcp.f32 %v258_v54 }
 0x149   :  { %v239_v51 = vpop.eup %238 }
 0x14a   :  { %v139_v52 = vmul.f32 0.6931472, %v239_v51  ;;  %v241_v57 = vpop.eup %240 }
 0x14b   :  { %v175_v59 = vmul.f32 8.0, %v241_v57  ;;  %vm179_vm5 = vweird.f32 %v241_v57 }
 0x14c   :  { %v140_v53 = vsel %vm43_vm4, %v139_v52, 0.0 }
 0x14d   :  { %141 = vadd.xlane.f32.xlu1 %v140_v53  ;;  %v176_v62 = vsub.f32 1.0, %v175_v59 }
 0x14f   :  { %v177_v2 = vmul.f32 %v241_v57, %v176_v62 }
 0x151   :  { %v178_v6 = vadd.f32 %v241_v57, %v177_v2 }
 0x153   :  { %v180_v10 = vsel %vm179_vm5, %v241_v57, %v178_v6 }
 0x158   :  { %v161_v55 = vpop.xlane.xlu2 %160 }
 0x159   :  { %v162_v56 = vrot.slane %v161_v55, 4 }
 0x15b   :  { %v163_v58 = vadd.f32 %v162_v56, %v161_v55 }
 0x15d   :  { %v164_v60 = vrot.slane %v163_v58, 2 }
 0x15f   :  { %v165_v1 = vadd.f32 %v164_v60, %v163_v58 }
 0x161   :  { %v166_v5 = vrot.slane %v165_v1, 1 }
 0x163   :  { %v167_v9 = vadd.f32 %v166_v5, %v165_v1 }
 0x16b   :  { %s219_s4 = spop %218 }
 0x1c0   :  { %v142_v61 = vpop.xlane.xlu1 %141 }
 0x1c1   :  { %v143_v63 = vrot.slane %v142_v61, 4 }
 0x1c3   :  { %v144_v0 = vadd.f32 %v143_v63, %v142_v61 }
 0x1c5   :  { %v145_v3 = vrot.slane %v144_v0, 2 }
 0x1c7   :  { %v146_v4 = vadd.f32 %v145_v3, %v144_v0 }
 0x1c9   :  { %v147_v7 = vrot.slane %v146_v4, 1 }
 0x1cb   :  { %v148_v8 = vadd.f32 %v147_v7, %v146_v4 }
 0x1cd   :  { %220 = vpush %v148_v8 }
 0x1ce   :  { %222 = vpush %v167_v9 }
 0x1cf   :  { %224 = vpush %v180_v10 }
 0x1fe   :  { %s221_s26 = spop %220 }
 0x1ff   :  { %s171_s27 = sadd.f32 %s221_s26, %s170_s3  ;;  %s223_s28 = spop %222 }
 0x200   :  { %s183_s29 = sadd.f32 %s223_s28, %s170_s3  ;;  %s225_s30 = spop %224 }
 0x201   :  { %s173_s6 = ssub.f32 %s171_s27, %s219_s4 }
 0x202   :  { %s184_s7 = ssub.f32 %s183_s29, %s219_s4 }
 0x203   :  { %s182_s8 = smul.f32 %s225_s30, %s173_s6 }
 0x204   :  { %s193_s9 = smul.f32 %s225_s30, %s184_s7 }
 0x206   :  { %s194_s13 = sadd.f32 %s193_s9, %s182_s8 }
 0x208   :  { %s195_s14 = smul.f32 0.5, %s194_s13 }
 0x20a   :  { %197 = sst [smem:[#allocation7]] %s195_s14 }
 0x20b   :  { %206 = dma.smem_to_hbm %s259_s15, 16, %s204_s12, [#allocation8]  }
 0x20c   :  { %254 = dma.done.wait [#allocation8], 16  }
 0x20d   :  { %255 = vsyncadd [#allocation8], 4294967280 }
 0x20e   :  { %211 = sfence }
 0x20f   :  { %212 = vsyncpa [#allocation8], 1 }

</bundles_post_ra>
